<compile_context>
chip_gen: v7x
topology: tpu7x:2x2x1
jax: 0.10.0
libtpu: 0.0.40
codegen_flags: <defaults>
</compile_context>

<pallas_src>
import jax
import jax.numpy as jnp
from jax.experimental import pallas as pl
from jax.experimental.pallas import tpu as pltpu

_LANE = 128                 # TPU lane width (last dim of every tile)
_MAX_ROWS_PER_STEP = 8192   # rows of 128 per grid step: ~24 MiB double-buffered
_VMEM_LIMIT_BYTES = 40 * 1024 * 1024   # headroom on every generation (v7x: 64 MiB phys)


def _mlp_kernel(p_ref, x_ref, o_ref):
    """p_ref: SMEM f32[17] packed as [w1 (4x2 row-major) | b1 (4) | w2 (4) | b2 (1)]
       x_ref: VMEM f32[2, Rt, 128]   (feature planes over a dense batch slab)
       o_ref: VMEM f32[Rt, 128]"""
    x0 = x_ref[0]                      # (Rt, 128)
    x1 = x_ref[1]                      # (Rt, 128)

    # fc2 bias as the accumulator start, broadcast over the slab.
    acc = jnp.full_like(x0, p_ref[16])

    # Unrolled fc1 + ReLU + fc2 contraction: pure VPU FMAs (MXU is overkill
    # for a 2x4x1 MLP).  Scalars come straight from SMEM; broadcasts are
    # hoisted once per kernel body.
    for j in range(4):
        hj = jnp.maximum(
            p_ref[2 * j] * x0 + p_ref[2 * j + 1] * x1 + p_ref[8 + j], 0.0
        )
        acc = acc + p_ref[12 + j] * hj

    # Sigmoid runs on the EUP slot; fully hidden under the DMA stream.
    o_ref[...] = jax.nn.sigmoid(acc).astype(o_ref.dtype)


def _forward_reference(x, params):
    """Plain-JAX forward (identical math to the PyTorch module)."""
    h = jnp.maximum(x @ params["w1"].T + params["b1"], 0.0)
    return jax.nn.sigmoid(h @ params["w2"].T + params["b2"])


def neural_network_forward(x, params, *, min_kernel_batch=16384):
    """x: (B, 2) float32.  Returns (B, 1) float32 (same math as the nn.Module).

    Small batches are dominated by pad-to-128 / launch / pipeline warm-up, so
    they take a fused XLA fallback.  Pass min_kernel_batch=0 to force the
    Pallas path (used in the demo below)."""
    B = x.shape[0]
    if B < min_kernel_batch:
        return _forward_reference(x.astype(jnp.float32), params).reshape(B, 1)

    # ---- dense slab layout: batch spread over (rows, 128 lanes) ----
    rows = -(-B // _LANE)                         # ceil(B / 128)
    rt = min(rows, _MAX_ROWS_PER_STEP)            # rows per grid step
    rows_pad = -(-rows // rt) * rt                # grid divides evenly
    b_pad = rows_pad * _LANE

    # One-shot pad + transpose + reshape -> (2, rows_pad, 128) feature planes.
    x_pad = jnp.pad(x.astype(jnp.float32), ((0, b_pad - B), (0, 0)))
    x_slab = x_pad.T.reshape(2, rows_pad, _LANE)

    # Pack the 17 parameter scalars into one SMEM-resident array.  The
    # constant index_map below means the pipeliner only transfers it once.
    w1, b1, w2, b2 = params["w1"], params["b1"], params["w2"], params["b2"]
    packed = jnp.concatenate(
        [w1.reshape(-1), b1.reshape(-1), w2.reshape(-1), b2.reshape(-1)]
    ).astype(jnp.float32)                          # (17,)

    out_slab = pl.pallas_call(
        _mlp_kernel,
        out_shape=jax.ShapeDtypeStruct((rows_pad, _LANE), jnp.float32),
        grid=(rows_pad // rt,),
        in_specs=[
            pl.BlockSpec(memory_space=pltpu.MemorySpace.SMEM),      # params (whole, once)
            pl.BlockSpec((2, rt, _LANE), lambda i: (0, i, 0)),      # x slab tile
        ],
        out_specs=pl.BlockSpec((rt, _LANE), lambda i: (i, 0)),      # lane-dense output
        compiler_params=pltpu.CompilerParams(
            # Batch tiles are fully independent -> shards across the two
            # TensorCores on v7x; measured no-op (harmless) on v5e/v6e.
            dimension_semantics=("parallel",),
            vmem_limit_bytes=_VMEM_LIMIT_BYTES,
        ),
    )(packed, x_slab)

    return out_slab.reshape(-1)[:B].reshape(B, 1)


def init_params(key):
    """fc1: Linear(2, 4) -> W1 (4, 2), b1 (4,);  fc2: Linear(4, 1) -> W2 (1, 4), b2 (1,)
       PyTorch default init: U(-1/sqrt(fan_in), 1/sqrt(fan_in))."""
    k1, k2, k3, k4 = jax.random.split(key, 4)
    lim1 = 1.0 / jnp.sqrt(2.0)
    lim2 = 1.0 / jnp.sqrt(4.0)
    return {
        "w1": jax.random.uniform(k1, (4, 2), jnp.float32, -lim1, lim1),
        "b1": jax.random.uniform(k2, (4,), jnp.float32, -lim1, lim1),
        "w2": jax.random.uniform(k3, (1, 4), jnp.float32, -lim2, lim2),
        "b2": jax.random.uniform(k4, (1,), jnp.float32, -lim2, lim2),
    }


if __name__ == "__main__":
    key = jax.random.PRNGKey(0)
    pkey, xkey = jax.random.split(key)
    params = init_params(pkey)

    # Small demo batch; min_kernel_batch=0 forces the Pallas path.
    B = 8
    x = jax.random.normal(xkey, (B, 2), jnp.float32)
    out = neural_network_forward(x, params, min_kernel_batch=0)
    out = jax.block_until_ready(out)

    y_ref = _forward_reference(x, params)
    assert out.shape == (B, 1)
    assert jnp.allclose(out, y_ref, atol=1e-5), "kernel mismatch vs reference"

    # Second small case exercising multiple rows-of-128 inside one block.
    B2 = 300
    x2 = jax.random.normal(jax.random.PRNGKey(1), (B2, 2), jnp.float32)
    out2 = jax.block_until_ready(
        neural_network_forward(x2, params, min_kernel_batch=0)
    )
    assert jnp.allclose(out2, _forward_reference(x2, params), atol=1e-5)

    # Fallback path (plain XLA) must agree as well.
    out_fb = jax.block_until_ready(neural_network_forward(x, params))
    assert jnp.allclose(out_fb, y_ref, atol=1e-5)

    print("KERNEL_OK")
</pallas_src>

<mosaic_0001>
module attributes {stable_mosaic.version = 11 : i64} {
  func.func @_mlp_kernel(%arg0: i32, %arg1: memref<17xf32, #tpu.memory_space<smem>>, %arg2: memref<2x1x128xf32, #tpu.memory_space<vmem>>, %arg3: memref<1x128xf32, #tpu.memory_space<vmem>>) attributes {dimension_semantics = [#tpu.dimension_semantics<parallel>], iteration_bounds = array<i64: 1>, scalar_prefetch = 0 : i64, scratch_operands = 0 : i64, tpu.core_type = #tpu.core_type<tc>, window_params = [{transform_indices = @transform_0, window_bounds = array<i64: 17>}, {transform_indices = @transform_1, window_bounds = array<i64: 2, 1, 128>}, {transform_indices = @transform_2, window_bounds = array<i64: 1, 128>}]} {
    %c0 = arith.constant 0 : index
    %c0_0 = arith.constant 0 : index
    %c0_1 = arith.constant 0 : index
    %0 = vector.load %arg2[%c0, %c0_0, %c0_1] : memref<2x1x128xf32, #tpu.memory_space<vmem>>, vector<1x1x128xf32>
    %1 = vector.shape_cast %0 : vector<1x1x128xf32> to vector<1x128xf32>
    %c1 = arith.constant 1 : index
    %c0_2 = arith.constant 0 : index
    %c0_3 = arith.constant 0 : index
    %2 = vector.load %arg2[%c1, %c0_2, %c0_3] : memref<2x1x128xf32, #tpu.memory_space<vmem>>, vector<1x1x128xf32>
    %3 = vector.shape_cast %2 : vector<1x1x128xf32> to vector<1x128xf32>
    %c16 = arith.constant 16 : index
    %4 = memref.load %arg1[%c16] : memref<17xf32, #tpu.memory_space<smem>>
    %5 = vector.broadcast %4 : f32 to vector<1x128xf32>
    %c0_4 = arith.constant 0 : index
    %6 = memref.load %arg1[%c0_4] : memref<17xf32, #tpu.memory_space<smem>>
    %7 = vector.broadcast %6 : f32 to vector<1x128xf32>
    %8 = arith.mulf %7, %1 : vector<1x128xf32>
    %c1_5 = arith.constant 1 : index
    %9 = memref.load %arg1[%c1_5] : memref<17xf32, #tpu.memory_space<smem>>
    %10 = vector.broadcast %9 : f32 to vector<1x128xf32>
    %11 = arith.mulf %10, %3 : vector<1x128xf32>
    %12 = arith.addf %8, %11 : vector<1x128xf32>
    %c8 = arith.constant 8 : index
    %13 = memref.load %arg1[%c8] : memref<17xf32, #tpu.memory_space<smem>>
    %14 = vector.broadcast %13 : f32 to vector<1x128xf32>
    %15 = arith.addf %12, %14 : vector<1x128xf32>
    %cst = arith.constant 0.000000e+00 : f32
    %16 = vector.broadcast %cst : f32 to vector<1x128xf32>
    %17 = arith.maximumf %15, %16 : vector<1x128xf32>
    %c12 = arith.constant 12 : index
    %18 = memref.load %arg1[%c12] : memref<17xf32, #tpu.memory_space<smem>>
    %19 = vector.broadcast %18 : f32 to vector<1x128xf32>
    %20 = arith.mulf %19, %17 : vector<1x128xf32>
    %21 = arith.addf %5, %20 : vector<1x128xf32>
    %c2 = arith.constant 2 : index
    %22 = memref.load %arg1[%c2] : memref<17xf32, #tpu.memory_space<smem>>
    %23 = vector.broadcast %22 : f32 to vector<1x128xf32>
    %24 = arith.mulf %23, %1 : vector<1x128xf32>
    %c3 = arith.constant 3 : index
    %25 = memref.load %arg1[%c3] : memref<17xf32, #tpu.memory_space<smem>>
    %26 = vector.broadcast %25 : f32 to vector<1x128xf32>
    %27 = arith.mulf %26, %3 : vector<1x128xf32>
    %28 = arith.addf %24, %27 : vector<1x128xf32>
    %c9 = arith.constant 9 : index
    %29 = memref.load %arg1[%c9] : memref<17xf32, #tpu.memory_space<smem>>
    %30 = vector.broadcast %29 : f32 to vector<1x128xf32>
    %31 = arith.addf %28, %30 : vector<1x128xf32>
    %cst_6 = arith.constant 0.000000e+00 : f32
    %32 = vector.broadcast %cst_6 : f32 to vector<1x128xf32>
    %33 = arith.maximumf %31, %32 : vector<1x128xf32>
    %c13 = arith.constant 13 : index
    %34 = memref.load %arg1[%c13] : memref<17xf32, #tpu.memory_space<smem>>
    %35 = vector.broadcast %34 : f32 to vector<1x128xf32>
    %36 = arith.mulf %35, %33 : vector<1x128xf32>
    %37 = arith.addf %21, %36 : vector<1x128xf32>
    %c4 = arith.constant 4 : index
    %38 = memref.load %arg1[%c4] : memref<17xf32, #tpu.memory_space<smem>>
    %39 = vector.broadcast %38 : f32 to vector<1x128xf32>
    %40 = arith.mulf %39, %1 : vector<1x128xf32>
    %c5 = arith.constant 5 : index
    %41 = memref.load %arg1[%c5] : memref<17xf32, #tpu.memory_space<smem>>
    %42 = vector.broadcast %41 : f32 to vector<1x128xf32>
    %43 = arith.mulf %42, %3 : vector<1x128xf32>
    %44 = arith.addf %40, %43 : vector<1x128xf32>
    %c10 = arith.constant 10 : index
    %45 = memref.load %arg1[%c10] : memref<17xf32, #tpu.memory_space<smem>>
    %46 = vector.broadcast %45 : f32 to vector<1x128xf32>
    %47 = arith.addf %44, %46 : vector<1x128xf32>
    %cst_7 = arith.constant 0.000000e+00 : f32
    %48 = vector.broadcast %cst_7 : f32 to vector<1x128xf32>
    %49 = arith.maximumf %47, %48 : vector<1x128xf32>
    %c14 = arith.constant 14 : index
    %50 = memref.load %arg1[%c14] : memref<17xf32, #tpu.memory_space<smem>>
    %51 = vector.broadcast %50 : f32 to vector<1x128xf32>
    %52 = arith.mulf %51, %49 : vector<1x128xf32>
    %53 = arith.addf %37, %52 : vector<1x128xf32>
    %c6 = arith.constant 6 : index
    %54 = memref.load %arg1[%c6] : memref<17xf32, #tpu.memory_space<smem>>
    %55 = vector.broadcast %54 : f32 to vector<1x128xf32>
    %56 = arith.mulf %55, %1 : vector<1x128xf32>
    %c7 = arith.constant 7 : index
    %57 = memref.load %arg1[%c7] : memref<17xf32, #tpu.memory_space<smem>>
    %58 = vector.broadcast %57 : f32 to vector<1x128xf32>
    %59 = arith.mulf %58, %3 : vector<1x128xf32>
    %60 = arith.addf %56, %59 : vector<1x128xf32>
    %c11 = arith.constant 11 : index
    %61 = memref.load %arg1[%c11] : memref<17xf32, #tpu.memory_space<smem>>
    %62 = vector.broadcast %61 : f32 to vector<1x128xf32>
    %63 = arith.addf %60, %62 : vector<1x128xf32>
    %cst_8 = arith.constant 0.000000e+00 : f32
    %64 = vector.broadcast %cst_8 : f32 to vector<1x128xf32>
    %65 = arith.maximumf %63, %64 : vector<1x128xf32>
    %c15 = arith.constant 15 : index
    %66 = memref.load %arg1[%c15] : memref<17xf32, #tpu.memory_space<smem>>
    %67 = vector.broadcast %66 : f32 to vector<1x128xf32>
    %68 = arith.mulf %67, %65 : vector<1x128xf32>
    %69 = arith.addf %53, %68 : vector<1x128xf32>
    %70 = arith.negf %69 : vector<1x128xf32>
    %71 = math.exp %70 : vector<1x128xf32>
    %cst_9 = arith.constant 1.000000e+00 : f32
    %72 = vector.broadcast %cst_9 : f32 to vector<1x128xf32>
    %73 = arith.addf %72, %71 : vector<1x128xf32>
    %74 = arith.divf %72, %73 : vector<1x128xf32>
    %c0_10 = arith.constant 0 : index
    %c0_11 = arith.constant 0 : index
    %75 = vector.load %arg3[%c0_10, %c0_11] : memref<1x128xf32, #tpu.memory_space<vmem>>, vector<1x128xf32>
    tpu.vector_store %arg3[%c0_10, %c0_11], %74 {strides = array<i32>} : memref<1x128xf32, #tpu.memory_space<vmem>>, vector<1x128xf32>,
    return
  }
  func.func @transform_0(%arg0: i32) -> i32 {
    %c0_i32 = arith.constant 0 : i32
    %c0_i32_0 = arith.constant 0 : i32
    return %c0_i32 : i32
  }
  func.func @transform_1(%arg0: i32) -> (i32, i32, i32) {
    %c0_i32 = arith.constant 0 : i32
    %c0_i32_0 = arith.constant 0 : i32
    %c0_i32_1 = arith.constant 0 : i32
    return %c0_i32, %arg0, %c0_i32_0 : i32, i32, i32
  }
  func.func @transform_2(%arg0: i32) -> (i32, i32) {
    %c0_i32 = arith.constant 0 : i32
    %c0_i32_0 = arith.constant 0 : i32
    return %arg0, %c0_i32 : i32, i32
  }
}

</mosaic_0001>

<bundles_post_ra>
// kernel: tpu_custom_call.1
= control target key start
LH: loop header
LB: loop body
LE: loop exit
PB: predicated region body
PF: predicated region fallthrough
CT: control target
= control target key end

     0   :  { %7 = vsyncpa [#allocation4], 0  ;;  %s238_s0 = inlined_call_operand.hbm [shape: f32[17], index: 0, kind: input, shape index: {}]   ;;  %s239_s1 = inlined_call_operand.vmem [shape: f32[2,1,128], index: 1, kind: input, shape index: {}]   ;;  %s240_s2 = inlined_call_operand.hbm [shape: f32[1,128], index: 2, kind: output, shape index: {}]  }
   0x1   :  { %8 = vsyncpa [#allocation3], 0  ;;  %s134_s11 = scalar_lea.hbm %s238_s0, 16 }
   0x2   :  { %p135_p0 = scmp.ne.s32.totalorder %s238_s0, %s134_s11  ;;  %p138_p1 = scmp.lt.u32.totalorder %s134_s11, %s238_s0 }
   0x4   :  { %p140_p2 = pnand %p138_p1, %p135_p0 }
   0x6   :  { %143 = shalt.err (!%p140_p2)
}
   0x7   :  { %s170_s16 = smov [#allocation2]  }
   0x8   :  { %16 = dma.hbm_to_smem %s238_s0, 16, %s170_s16, [#allocation4]  }
   0x9   :  { %166 = dma.done.wait [#allocation4], 16  }
   0xa   :  { %167 = vsyncadd [#allocation4], 4294967280 }
   0xb   :  { %22 = sfence }
   0xc   :  { %s28_s19 = sld [smem:[#allocation2]]  ;;  %s112_s20 = sld [smem:[#allocation2 + $0x1]]  ;;  %v23_v0 = vld [vmem:[%s239_s1] sm:$0x1]  ;;  %v110_v1 = vld [vmem:[%s239_s1 + $0x1] sm:$0x1] }
   0xd   :  { %s199_s21 = sld [smem:[#allocation2 + $0x10]]  ;;  %s115_s23 = sld [smem:[#allocation2 + $0x2]] }
   0xe   :  { %s113_s22 = sld [smem:[#allocation2 + $0x8]]  ;;  %s116_s24 = sld [smem:[#allocation2 + $0x3]] }
   0xf   :  { %s204_s27 = sld [smem:[#allocation2 + $0xc]]  ;;  %s206_s28 = sld [smem:[#allocation2 + $0x9]] }
  0x10   :  { %s119_s30 = sld [smem:[#allocation2 + $0x4]]  ;;  %s120_s3 = sld [smem:[#allocation2 + $0x5]] }
  0x11   :  { %s211_s4 = sld [smem:[#allocation2 + $0xd]]  ;;  %s213_s5 = sld [smem:[#allocation2 + $0xa]] }
  0x12   :  { %v29_v2 = vstv %s28_s19  ;;  %v32_v3 = vstv %s112_s20  ;;  %s123_s6 = sld [smem:[#allocation2 + $0x6]]  ;;  %s124_s7 = sld [smem:[#allocation2 + $0x7]] }
  0x13   :  { %v30_v4 = vmul.f32 %v29_v2, %v23_v0  ;;  %v33_v5 = vmul.f32 %v110_v1, %v32_v3  ;;  %s215_s8 = sld [smem:[#allocation2 + $0xb]]  ;;  %v44_v7 = vstv %s115_s23  ;;  %s217_s1 = sld [smem:[#allocation2 + $0xe]]  ;;  %v27_v27 = vstv %s199_s21 }
  0x14   :  { %v36_v6 = vstv %s113_s22  ;;  %v47_v8 = vstv %s116_s24  ;;  %v45_v10 = vmul.f32 %v44_v7, %v23_v0  ;;  %s126_s9 = sld [smem:[#allocation2 + $0xf]]  ;;  %s171_s10 = smov [#allocation5]  }
  0x15   :  { %v34_v9 = vadd.f32 %v33_v5, %v30_v4  ;;  %v48_v11 = vmul.f32 %v110_v1, %v47_v8  ;;  %v51_v12 = vstv %s206_s28  ;;  %v40_v19 = vstv %s204_s27  ;;  %s101_s11 = sshll.u32 %s171_s10, 4  ;;  %s102_s11 = int_to_ptr.vmem [resolvable:$true] %s101_s11 }
  0x16   :  { %v59_v13 = vstv %s119_s30  ;;  %v62_v14 = vstv %s120_s3  ;;  %s144_s12 = scalar_lea.vmem %s102_s11, 16  ;;  %s148_s13 = scalar_lea.vmem %s102_s11, 32 }
  0x17   :  { %v37_v15 = vadd.f32 %v36_v6, %v34_v9  ;;  %v49_v16 = vadd.f32 %v48_v11, %v45_v10  ;;  %v60_v17 = vmul.f32 %v59_v13, %v23_v0  ;;  %v63_v18 = vmul.f32 %v110_v1, %v62_v14  ;;  %p145_p3 = scmp.ne.s32.totalorder %s102_s11, %s144_s12  ;;  %p149_p4 = scmp.lt.s32.totalorder %s102_s11, %s102_s11 }
  0x18   :  { %v66_v20 = vstv %s213_s5  ;;  %v74_v21 = vstv %s123_s6  ;;  %v77_v22 = vstv %s124_s7  ;;  %v55_v28 = vstv %s211_s4  ;;  %p150_p5 = scmp.lt.s32.totalorder %s148_s13, %s144_s12 }
  0x19   :  { %v38_v23 = vmax.f32 %v37_v15, 0.0  ;;  %v52_v24 = vadd.f32 %v51_v12, %v49_v16  ;;  %v64_v25 = vadd.f32 %v63_v18, %v60_v17  ;;  %v75_v26 = vmul.f32 %v74_v21, %v23_v0 }
  0x1a   :  { %v78_v29 = vmul.f32 %v110_v1, %v77_v22  ;;  %v81_v33 = vstv %s215_s8  ;;  %v70_v34 = vstv %s217_s1  ;;  %v85_v42 = vstv %s126_s9  ;;  %p151_p6 = por %p150_p5, %p149_p4 }
  0x1b   :  { %v41_v30 = vmul.f32 %v40_v19, %v38_v23  ;;  %v53_v31 = vmax.f32 %v52_v24, 0.0  ;;  %v67_v32 = vadd.f32 %v66_v20, %v64_v25 }
  0x1c   :  { %v79_v35 = vadd.f32 %v78_v29, %v75_v26  ;;  %p152_p7 = pnand %p151_p6, %p145_p3 }
  0x1d   :  { %v42_v36 = vadd.f32 %v41_v30, %v27_v27  ;;  %v56_v37 = vmul.f32 %v55_v28, %v53_v31  ;;  %v68_v38 = vmax.f32 %v67_v32, 0.0 }
  0x1e   :  { %v82_v39 = vadd.f32 %v81_v33, %v79_v35 }
  0x1f   :  { %v57_v40 = vadd.f32 %v56_v37, %v42_v36  ;;  %v71_v41 = vmul.f32 %v70_v34, %v68_v38 }
  0x20   :  { %v83_v43 = vmax.f32 %v82_v39, 0.0 }
  0x21   :  { %v72_v44 = vadd.f32 %v71_v41, %v57_v40 }
  0x22   :  { %v86_v45 = vmul.f32 %v85_v42, %v83_v43 }
  0x24   :  { %v87_v46 = vadd.f32 %v86_v45, %v72_v44 }
  0x26   :  { %v127_v47 = vmul.f32 -1.442695, %v87_v46 }
  0x28   :  { %130 = vpow2.f32 %v127_v47 }
  0x32   :  { %v131_v48 = vpop.eup %130 }
  0x33   :  { %v91_v49 = vadd.f32 1.0, %v131_v48 }
  0x35   :  { %132 = vrcp.f32 %v91_v49 }
  0x3f   :  { %v133_v50 = vpop.eup %132 }
  0x40   :  { %94 = vst [vmem:[#allocation5] sm:$0x1] %v133_v50 }
  0x41   :  { %155 = shalt.err (!%p152_p7)
}
  0x42   :  { %s156_s16 = scalar_lea.hbm %s240_s2, 16 }
  0x43   :  { %p157_p8 = scmp.ne.s32.totalorder %s240_s2, %s156_s16  ;;  %p160_p9 = scmp.lt.u32.totalorder %s156_s16, %s240_s2 }
  0x45   :  { %p162_p10 = pnand %p160_p9, %p157_p8 }
  0x47   :  { %165 = shalt.err (!%p162_p10)
}
  0x48   :  { %104 = dma.vmem_to_hbm [thread:$0]  %s102_s11, 16, %s240_s2, [#allocation3]  }
  0x49   :  { %168 = dma.done.wait [#allocation3], 16  }
  0x4a   :  { %169 = vsyncadd [#allocation3], 4294967280 }
  0x4b   :  { %108 = vsyncpa [#allocation3], 1 }
  0x4c   :  { %109 = vsyncpa [#allocation4], 1 }

</bundles_post_ra>
